<compile_context>
chip_gen: v6e
topology: v6e:2x2x1
jax: 0.10.0
libtpu: 0.0.40
codegen_flags: <defaults>
</compile_context>

<pallas_src>
import jax
import jax.numpy as jnp
from jax import lax
from jax.experimental import pallas as pl
from jax.experimental.pallas import tpu as pltpu

# ---------------- problem sizes (small, consistent with the module) ----------
B      = 2            # batch
C_IN   = 4            # input channels
H = W  = 16           # spatial
KH = KW = 3           # conv kernel
C_CONV = 8            # conv output channels
FEAT   = 32           # embedding ("feature") dim produced by the backbone
HID    = 16           # MLP hidden dim
HW     = H * W
K_IM2COL = KH * KW * C_IN            # 36

# lane-level packing constants
XLANES = (W + 2) * C_IN + 1          # 73: padded-width x channels (+ const-1 lane for bc)
NPACK  = W * C_CONV                  # 128: conv output packed as x*C_CONV + co
FPAD   = 128                         # feature lanes (feat in [0, FEAT))
HPAD   = 128                         # hidden lanes (hid in [0, HID), col 127 = const 1)
PRED_COL = FEAT                      # output-slab column carrying the quality score
                                     # (NOTE: only valid while FEAT < FPAD and pred
                                     #  does not overlap the feat columns [0, FEAT))
assert NPACK == 128, "conv output packing relies on W * C_CONV == 128"


# ---------------- Pallas kernel ----------------------------------------------
def ediffiqa_kernel(x_ref, tconv_ref, wfeat_ref, whid_ref, bias_ref, w2_ref,
                    out_ref):
    blk_b = out_ref.shape[0]
    rows = H * blk_b

    xs = x_ref[...]                                     # (H+2, blk_b, XLANES)

    # fused im2col conv: 3 Toeplitz matmuls, one per kernel row dy.
    # row index of each tap = y*blk_b + b; output lanes = x*C_CONV + co.
    acc = jnp.zeros((rows, NPACK), jnp.float32)
    for dy in range(KH):                                # static 3-way unroll
        tap = xs[dy:dy + H].reshape(rows, XLANES)       # leading-dim slice: free
        acc = acc + jnp.dot(tap, tconv_ref[dy],
                            preferred_element_type=jnp.float32)
    conv = jnp.maximum(acc, 0.0)                        # (rows, 128), bias bc included

    # pool over y: plain plane sum (VPU adds); pool over x is folded into the
    # replicated / pre-scaled projection weights below.
    rowsum = conv.reshape(H, blk_b, NPACK).sum(axis=0)  # (blk_b, 128)

    biases = bias_ref[...]                              # (2, FPAD)
    # feat and hidden both depend only on rowsum (no feat -> w1 chain).
    feat = jnp.dot(rowsum, wfeat_ref[...],
                   preferred_element_type=jnp.float32) + biases[0:1]      # (blk_b, FPAD)
    h = jnp.maximum(
        jnp.dot(rowsum, whid_ref[...],
                preferred_element_type=jnp.float32) + biases[1:2], 0.0)   # (blk_b, HPAD)

    # final N=1 head: VPU multiply + lane reduce (b2 folded via const-1 hidden col).
    pred = jnp.sum(h * w2_ref[...], axis=-1, keepdims=True)               # (blk_b, 1)

    # single lane-dense output slab: cols [0, FEAT) = feat, col PRED_COL = pred.
    lane = lax.broadcasted_iota(jnp.int32, out_ref.shape, 1)
    out_ref[...] = jnp.where(lane == PRED_COL, pred, feat)


# ---------------- wrapper ------------------------------------------------------
@jax.jit
def ediffiqa_forward(x_nchw, packed_params):
    """x_nchw: [B, C_IN, H, W] float32. Returns (feat [B, FEAT], pred [B, 1])."""
    tconv, wfeat_p, whid_p, bias_p, w2_p = packed_params
    batch = x_nchw.shape[0]
    block_b = 8 if batch <= 8 else 32          # amortize step overhead for real batches
    n_blocks = -(-batch // block_b)
    b_pad = n_blocks * block_b

    # NCHW -> (H, B, W, C) -> spatial pad 1 -> flatten (W+2, C) lanes -> const-1 lane.
    # Total HBM footprint of this glue is ~b_pad * 18 * 73 * 4 bytes (tiny).
    x = jnp.transpose(x_nchw, (2, 0, 3, 1)).astype(jnp.float32)    # (H, batch, W, C_IN)
    xp = jnp.pad(x, ((1, 1), (0, b_pad - batch), (1, 1), (0, 0)))  # (H+2, b_pad, W+2, C_IN)
    xs = xp.reshape(H + 2, b_pad, (W + 2) * C_IN)
    xs = jnp.concatenate(
        [xs, jnp.ones((H + 2, b_pad, 1), jnp.float32)], axis=-1)   # (H+2, b_pad, 73)

    rows = H * block_b
    flops_blk = 2 * (KH * rows * XLANES * NPACK
                     + block_b * NPACK * FPAD
                     + block_b * NPACK * HPAD)
    x_bytes_blk = (H + 2) * block_b * XLANES * 4
    out_bytes_blk = block_b * FPAD * 4
    w_bytes = (KH * XLANES * NPACK + NPACK * FPAD + NPACK * HPAD
               + 2 * FPAD + HPAD) * 4                   # grid-invariant: counted once

    out = pl.pallas_call(
        ediffiqa_kernel,
        out_shape=jax.ShapeDtypeStruct((b_pad, FPAD), jnp.float32),
        grid_spec=pltpu.PrefetchScalarGridSpec(
            num_scalar_prefetch=0,
            grid=(n_blocks,),
            in_specs=[
                pl.BlockSpec((H + 2, block_b, XLANES), lambda b: (0, b, 0)),  # activations
                pl.BlockSpec((KH, XLANES, NPACK), lambda b: (0, 0, 0)),       # Toeplitz conv w (+bc)
                pl.BlockSpec((NPACK, FPAD), lambda b: (0, 0)),                # pooled -> feat (+1/HW)
                pl.BlockSpec((NPACK, HPAD), lambda b: (0, 0)),                # pooled -> hidden (wp@w1)
                pl.BlockSpec((2, FPAD), lambda b: (0, 0)),                    # [bp ; bp@w1+b1, const1]
                pl.BlockSpec((1, HPAD), lambda b: (0, 0)),                    # w2 row (+b2)
            ],
            out_specs=pl.BlockSpec((block_b, FPAD), lambda b: (b, 0)),
        ),
        compiler_params=pltpu.CompilerParams(
            dimension_semantics=("parallel",)),
        cost_estimate=pl.CostEstimate(
            flops=n_blocks * flops_blk,
            transcendentals=0,
            bytes_accessed=n_blocks * (x_bytes_blk + out_bytes_blk) + w_bytes),
    )(xs, tconv, wfeat_p, whid_p, bias_p, w2_p)

    feat = out[:batch, :FEAT]
    pred = out[:batch, PRED_COL:PRED_COL + 1]
    return feat, pred


# ---------------- deterministic parameter init --------------------------------
def make_params(key):
    ks = jax.random.split(key, 8)
    scale = 0.1
    wc = scale * jax.random.normal(ks[0], (K_IM2COL, C_CONV), jnp.float32)
    bc = scale * jax.random.normal(ks[1], (1, C_CONV), jnp.float32)
    wp = scale * jax.random.normal(ks[2], (C_CONV, FEAT), jnp.float32)
    bp = scale * jax.random.normal(ks[3], (1, FEAT), jnp.float32)
    w1 = scale * jax.random.normal(ks[4], (FEAT, HID), jnp.float32)
    b1 = scale * jax.random.normal(ks[5], (1, HID), jnp.float32)
    w2 = scale * jax.random.normal(ks[6], (HID, 1), jnp.float32)
    b2 = scale * jax.random.normal(ks[7], (1, 1), jnp.float32)
    return (wc, bc, wp, bp, w1, b1, w2, b2)


def pack_params(params):
    """Pack weights into the lane-dense, bias-folded matrices used by the kernel.

      tconv[dy, xc*C_IN+ci, x*C_CONV+co] = wc[(dy*KW+dx)*C_IN+ci, co]  (dx = xc-x in [0,KW))
      tconv[0,  XLANES-1,  x*C_CONV+co]  = bc[co]        (const-1 input lane)
      wfeat[x*C_CONV+co, f]              = wp[co, f] / HW  (x-pool folded in)
      whid [x*C_CONV+co, k]              = (wp@w1)[co, k] / HW
      bias  row0 = bp, row1 = bp@w1 + b1 (+ const-1 at col HPAD-1)
      w2row[:HID] = w2, col HPAD-1 = b2
    """
    wc, bc, wp, bp, w1, b1, w2, b2 = params

    # --- Toeplitz conv weights (vectorized construction, no per-element sets) ---
    wc3 = wc.reshape(KH, KW, C_IN, C_CONV)                       # (3, 3, 4, 8)
    xc = jnp.arange(W + 2)                                       # padded col index
    xo = jnp.arange(W)                                           # output col index
    dx = xc[:, None] - xo[None, :]                               # (18, 16)
    valid = (dx >= 0) & (dx < KW)
    dxc = jnp.clip(dx, 0, KW - 1)
    blocks = jnp.where(valid[None, :, :, None, None],
                       wc3[:, dxc, :, :], 0.0)                   # (3, 18, 16, 4, 8)
    tmat = blocks.transpose(0, 1, 3, 2, 4).reshape(KH, (W + 2) * C_IN, NPACK)
    bias_row = jnp.zeros((KH, 1, NPACK), jnp.float32)
    bias_row = bias_row.at[0, 0, :].set(jnp.tile(bc[0], W))      # bc once per output row
    tconv = jnp.concatenate([tmat, bias_row], axis=1)            # (3, 73, 128)

    # --- pooled -> feat (x-pool and 1/HW folded into replicated wp) ---
    wfeat_p = jnp.zeros((NPACK, FPAD), jnp.float32)
    wfeat_p = wfeat_p.at[:, :FEAT].set(jnp.tile(wp, (W, 1)) / HW)

    # --- pooled -> hidden (precomputed wp @ w1 breaks the feat->w1 chain) ---
    whid_p = jnp.zeros((NPACK, HPAD), jnp.float32)
    whid_p = whid_p.at[:, :HID].set(jnp.tile(wp @ w1, (W, 1)) / HW)

    # --- biases: row 0 = bp, row 1 = bp@w1 + b1 and const-1 hidden column ---
    bias_p = jnp.zeros((2, FPAD), jnp.float32)
    bias_p = bias_p.at[0, :FEAT].set(bp[0])
    bias_p = bias_p.at[1, :HID].set((bp @ w1 + b1)[0])
    bias_p = bias_p.at[1, HPAD - 1].set(1.0)                     # const-1 hidden lane

    # --- head row (+ b2 on the const-1 hidden lane) ---
    w2_p = jnp.zeros((1, HPAD), jnp.float32)
    w2_p = w2_p.at[0, :HID].set(w2[:, 0])
    w2_p = w2_p.at[0, HPAD - 1].set(b2[0, 0])

    return (tconv, wfeat_p, whid_p, bias_p, w2_p)


# ---------------- pure-JAX reference (for correctness check) ------------------
def reference_forward(x_nchw, params):
    wc, bc, wp, bp, w1, b1, w2, b2 = params
    batch = x_nchw.shape[0]
    x = jnp.transpose(x_nchw, (0, 2, 3, 1))
    xp = jnp.pad(x, ((0, 0), (1, 1), (1, 1), (0, 0)))
    taps = [xp[:, dy:dy + H, dx:dx + W, :]
            for dy in range(KH) for dx in range(KW)]
    patches = jnp.stack(taps, axis=3).reshape(batch, HW, K_IM2COL)
    conv = jnp.maximum(jnp.einsum('bpk,kc->bpc', patches, wc) + bc[None, :, :], 0.0)
    pooled = jnp.mean(conv, axis=1)
    feat = pooled @ wp + bp
    h = jnp.maximum(feat @ w1 + b1, 0.0)
    pred = h @ w2 + b2
    return feat, pred


if __name__ == "__main__":
    key = jax.random.PRNGKey(0)
    kx, kp = jax.random.split(key)
    x = jax.random.normal(kx, (B, C_IN, H, W), jnp.float32)   # NCHW like PyTorch
    params = make_params(kp)
    packed = pack_params(params)

    feat, pred = ediffiqa_forward(x, packed)
    jax.block_until_ready((feat, pred))

    feat_ref, pred_ref = reference_forward(x, params)
    assert feat.shape == (B, FEAT) and pred.shape == (B, 1)
    assert jnp.allclose(feat, feat_ref, atol=1e-4, rtol=1e-4)
    assert jnp.allclose(pred, pred_ref, atol=1e-4, rtol=1e-4)

    print("KERNEL_OK")
</pallas_src>

<mosaic_0001>
module attributes {stable_mosaic.version = 11 : i64} {
  func.func @ediffiqa_kernel(%arg0: i32, %arg1: memref<18x8x73xf32, #tpu.memory_space<vmem>>, %arg2: memref<3x73x128xf32, #tpu.memory_space<vmem>>, %arg3: memref<128x128xf32, #tpu.memory_space<vmem>>, %arg4: memref<128x128xf32, #tpu.memory_space<vmem>>, %arg5: memref<2x128xf32, #tpu.memory_space<vmem>>, %arg6: memref<1x128xf32, #tpu.memory_space<vmem>>, %arg7: memref<8x128xf32, #tpu.memory_space<vmem>>) attributes {dimension_semantics = [#tpu.dimension_semantics<parallel>], iteration_bounds = array<i64: 1>, scalar_prefetch = 0 : i64, scratch_operands = 0 : i64, tpu.core_type = #tpu.core_type<tc>, window_params = [{transform_indices = @transform_0, window_bounds = array<i64: 18, 8, 73>}, {pipeline_mode = #tpu.pipeline_mode<synchronous>, transform_indices = @transform_1, window_bounds = array<i64: 3, 73, 128>}, {pipeline_mode = #tpu.pipeline_mode<synchronous>, transform_indices = @transform_2, window_bounds = array<i64: 128, 128>}, {pipeline_mode = #tpu.pipeline_mode<synchronous>, transform_indices = @transform_3, window_bounds = array<i64: 128, 128>}, {pipeline_mode = #tpu.pipeline_mode<synchronous>, transform_indices = @transform_4, window_bounds = array<i64: 2, 128>}, {pipeline_mode = #tpu.pipeline_mode<synchronous>, transform_indices = @transform_5, window_bounds = array<i64: 1, 128>}, {transform_indices = @transform_6, window_bounds = array<i64: 8, 128>}]} {
    %c0 = arith.constant 0 : index
    %c0_0 = arith.constant 0 : index
    %c0_1 = arith.constant 0 : index
    %0 = vector.load %arg1[%c0, %c0_0, %c0_1] : memref<18x8x73xf32, #tpu.memory_space<vmem>>, vector<18x8x73xf32>
    %cst = arith.constant 0.000000e+00 : f32
    %1 = vector.broadcast %cst : f32 to vector<128x128xf32>
    %2 = vector.extract_strided_slice %0 {offsets = [0, 0, 0], sizes = [16, 8, 73], strides = [1, 1, 1]} : vector<18x8x73xf32> to vector<16x8x73xf32>
    %3 = vector.shape_cast %2 : vector<16x8x73xf32> to vector<128x73xf32>
    %c0_2 = arith.constant 0 : index
    %c0_3 = arith.constant 0 : index
    %c0_4 = arith.constant 0 : index
    %4 = vector.load %arg2[%c0_2, %c0_3, %c0_4] : memref<3x73x128xf32, #tpu.memory_space<vmem>>, vector<1x73x128xf32>
    %5 = vector.shape_cast %4 : vector<1x73x128xf32> to vector<73x128xf32>
    %cst_5 = arith.constant dense<0.000000e+00> : vector<128x128xf32>
    %6 = tpu.matmul %3, %5, %cst_5 {dimension_numbers = #tpu.dot_dimension_numbers<[1], [0], [0], [1], [0, 0, 1, 1], [], []>} : vector<128x73xf32>, vector<73x128xf32>, vector<128x128xf32> -> vector<128x128xf32>
    %7 = arith.addf %1, %6 : vector<128x128xf32>
    %8 = vector.extract_strided_slice %0 {offsets = [1, 0, 0], sizes = [16, 8, 73], strides = [1, 1, 1]} : vector<18x8x73xf32> to vector<16x8x73xf32>
    %9 = vector.shape_cast %8 : vector<16x8x73xf32> to vector<128x73xf32>
    %c1 = arith.constant 1 : index
    %c0_6 = arith.constant 0 : index
    %c0_7 = arith.constant 0 : index
    %10 = vector.load %arg2[%c1, %c0_6, %c0_7] : memref<3x73x128xf32, #tpu.memory_space<vmem>>, vector<1x73x128xf32>
    %11 = vector.shape_cast %10 : vector<1x73x128xf32> to vector<73x128xf32>
    %cst_8 = arith.constant dense<0.000000e+00> : vector<128x128xf32>
    %12 = tpu.matmul %9, %11, %cst_8 {dimension_numbers = #tpu.dot_dimension_numbers<[1], [0], [0], [1], [0, 0, 1, 1], [], []>} : vector<128x73xf32>, vector<73x128xf32>, vector<128x128xf32> -> vector<128x128xf32>
    %13 = arith.addf %7, %12 : vector<128x128xf32>
    %14 = vector.extract_strided_slice %0 {offsets = [2, 0, 0], sizes = [16, 8, 73], strides = [1, 1, 1]} : vector<18x8x73xf32> to vector<16x8x73xf32>
    %15 = vector.shape_cast %14 : vector<16x8x73xf32> to vector<128x73xf32>
    %c2 = arith.constant 2 : index
    %c0_9 = arith.constant 0 : index
    %c0_10 = arith.constant 0 : index
    %16 = vector.load %arg2[%c2, %c0_9, %c0_10] : memref<3x73x128xf32, #tpu.memory_space<vmem>>, vector<1x73x128xf32>
    %17 = vector.shape_cast %16 : vector<1x73x128xf32> to vector<73x128xf32>
    %cst_11 = arith.constant dense<0.000000e+00> : vector<128x128xf32>
    %18 = tpu.matmul %15, %17, %cst_11 {dimension_numbers = #tpu.dot_dimension_numbers<[1], [0], [0], [1], [0, 0, 1, 1], [], []>} : vector<128x73xf32>, vector<73x128xf32>, vector<128x128xf32> -> vector<128x128xf32>
    %19 = arith.addf %13, %18 : vector<128x128xf32>
    %cst_12 = arith.constant 0.000000e+00 : f32
    %20 = vector.broadcast %cst_12 : f32 to vector<128x128xf32>
    %21 = arith.maximumf %19, %20 : vector<128x128xf32>
    %22 = vector.shape_cast %21 : vector<128x128xf32> to vector<16x8x128xf32>
    %cst_13 = arith.constant dense<0.000000e+00> : vector<8x128xf32>
    %23 = vector.multi_reduction <add>, %22, %cst_13 [0] : vector<16x8x128xf32> to vector<8x128xf32>
    %c0_14 = arith.constant 0 : index
    %c0_15 = arith.constant 0 : index
    %24 = vector.load %arg5[%c0_14, %c0_15] : memref<2x128xf32, #tpu.memory_space<vmem>>, vector<2x128xf32>
    %c0_16 = arith.constant 0 : index
    %c0_17 = arith.constant 0 : index
    %25 = vector.load %arg3[%c0_16, %c0_17] : memref<128x128xf32, #tpu.memory_space<vmem>>, vector<128x128xf32>
    %cst_18 = arith.constant dense<0.000000e+00> : vector<8x128xf32>
    %26 = tpu.matmul %23, %25, %cst_18 {dimension_numbers = #tpu.dot_dimension_numbers<[1], [0], [0], [1], [0, 0, 1, 1], [], []>} : vector<8x128xf32>, vector<128x128xf32>, vector<8x128xf32> -> vector<8x128xf32>
    %27 = vector.extract_strided_slice %24 {offsets = [0, 0], sizes = [1, 128], strides = [1, 1]} : vector<2x128xf32> to vector<1x128xf32>
    %28 = vector.broadcast %27 : vector<1x128xf32> to vector<8x128xf32>
    %29 = arith.addf %26, %28 : vector<8x128xf32>
    %c0_19 = arith.constant 0 : index
    %c0_20 = arith.constant 0 : index
    %30 = vector.load %arg4[%c0_19, %c0_20] : memref<128x128xf32, #tpu.memory_space<vmem>>, vector<128x128xf32>
    %cst_21 = arith.constant dense<0.000000e+00> : vector<8x128xf32>
    %31 = tpu.matmul %23, %30, %cst_21 {dimension_numbers = #tpu.dot_dimension_numbers<[1], [0], [0], [1], [0, 0, 1, 1], [], []>} : vector<8x128xf32>, vector<128x128xf32>, vector<8x128xf32> -> vector<8x128xf32>
    %32 = vector.extract_strided_slice %24 {offsets = [1, 0], sizes = [1, 128], strides = [1, 1]} : vector<2x128xf32> to vector<1x128xf32>
    %33 = vector.broadcast %32 : vector<1x128xf32> to vector<8x128xf32>
    %34 = arith.addf %31, %33 : vector<8x128xf32>
    %cst_22 = arith.constant 0.000000e+00 : f32
    %35 = vector.broadcast %cst_22 : f32 to vector<8x128xf32>
    %36 = arith.maximumf %34, %35 : vector<8x128xf32>
    %c0_23 = arith.constant 0 : index
    %c0_24 = arith.constant 0 : index
    %37 = vector.load %arg6[%c0_23, %c0_24] : memref<1x128xf32, #tpu.memory_space<vmem>>, vector<1x128xf32>
    %38 = vector.broadcast %37 : vector<1x128xf32> to vector<8x128xf32>
    %39 = arith.mulf %36, %38 : vector<8x128xf32>
    %cst_25 = arith.constant dense<0.000000e+00> : vector<8xf32>
    %40 = vector.multi_reduction <add>, %39, %cst_25 [1] : vector<8x128xf32> to vector<8xf32>
    %41 = vector.shape_cast %40 : vector<8xf32> to vector<8x1xf32>
    %42 = tpu.iota {dimensions = array<i32: 1>} : vector<8x128xi32>
    %c32_i32 = arith.constant 32 : i32
    %43 = vector.broadcast %c32_i32 : i32 to vector<8x128xi32>
    %44 = arith.cmpi eq, %42, %43 : vector<8x128xi32>
    %45 = vector.shape_cast %41 : vector<8x1xf32> to vector<8x1xf32>
    %46 = vector.broadcast %45 : vector<8x1xf32> to vector<8x128xf32>
    %47 = arith.select %44, %46, %29 : vector<8x128xi1>, vector<8x128xf32>
    %c0_26 = arith.constant 0 : index
    %c0_27 = arith.constant 0 : index
    %48 = vector.load %arg7[%c0_26, %c0_27] : memref<8x128xf32, #tpu.memory_space<vmem>>, vector<8x128xf32>
    tpu.vector_store %arg7[%c0_26, %c0_27], %47 {strides = array<i32>} : memref<8x128xf32, #tpu.memory_space<vmem>>, vector<8x128xf32>,
    return
  }
  func.func @transform_0(%arg0: i32) -> (i32, i32, i32) {
    %c0_i32 = arith.constant 0 : i32
    %c0_i32_0 = arith.constant 0 : i32
    %c0_i32_1 = arith.constant 0 : i32
    return %c0_i32, %arg0, %c0_i32_0 : i32, i32, i32
  }
  func.func @transform_1(%arg0: i32) -> (i32, i32, i32) {
    %c0_i32 = arith.constant 0 : i32
    %c0_i32_0 = arith.constant 0 : i32
    %c0_i32_1 = arith.constant 0 : i32
    %c0_i32_2 = arith.constant 0 : i32
    return %c0_i32, %c0_i32_0, %c0_i32_1 : i32, i32, i32
  }
  func.func @transform_2(%arg0: i32) -> (i32, i32) {
    %c0_i32 = arith.constant 0 : i32
    %c0_i32_0 = arith.constant 0 : i32
    %c0_i32_1 = arith.constant 0 : i32
    return %c0_i32, %c0_i32_0 : i32, i32
  }
  func.func @transform_3(%arg0: i32) -> (i32, i32) {
    %c0_i32 = arith.constant 0 : i32
    %c0_i32_0 = arith.constant 0 : i32
    %c0_i32_1 = arith.constant 0 : i32
    return %c0_i32, %c0_i32_0 : i32, i32
  }
  func.func @transform_4(%arg0: i32) -> (i32, i32) {
    %c0_i32 = arith.constant 0 : i32
    %c0_i32_0 = arith.constant 0 : i32
    %c0_i32_1 = arith.constant 0 : i32
    return %c0_i32, %c0_i32_0 : i32, i32
  }
  func.func @transform_5(%arg0: i32) -> (i32, i32) {
    %c0_i32 = arith.constant 0 : i32
    %c0_i32_0 = arith.constant 0 : i32
    %c0_i32_1 = arith.constant 0 : i32
    return %c0_i32, %c0_i32_0 : i32, i32
  }
  func.func @transform_6(%arg0: i32) -> (i32, i32) {
    %c0_i32 = arith.constant 0 : i32
    %c0_i32_0 = arith.constant 0 : i32
    return %arg0, %c0_i32 : i32, i32
  }
}

</mosaic_0001>

<bundles_post_ra>
// kernel: ediffiqa_forward.1
= control target key start
LH: loop header
LB: loop body
LE: loop exit
PB: predicated region body
PF: predicated region fallthrough
CT: control target
= control target key end

     0   :  { %vm111_vm0 = vcmask 1040384   ;;  %vm62_vm1 = vcmask 596992   ;;  %v1229_v48 = vmov 0.0   ;;  %vm1230_vm2 = vmmov 0   ;;  %s1677_s1 = inlined_call_operand.vmem [shape: f32[3,73,128], index: 1, kind: input, shape index: {}]   ;;  %s1678_s0 = inlined_call_operand.vmem [shape: f32[18,8,73], index: 0, kind: input, shape index: {}]   ;;  %s1679_s3 = inlined_call_operand.vmem [shape: f32[128,128], index: 3, kind: input, shape index: {}]   ;;  %s1680_s2 = inlined_call_operand.vmem [shape: f32[128,128], index: 2, kind: input, shape index: {}]   ;;  %s1681_s4 = inlined_call_operand.vmem [shape: f32[2,128], index: 4, kind: input, shape index: {}]   ;;  %s1682_s5 = inlined_call_operand.vmem [shape: f32[1,128], index: 5, kind: input, shape index: {}]   ;;  %s1683_s6 = inlined_call_operand.vmem [shape: f32[8,128], index: 6, kind: output, shape index: {}]  }
   0x1   :  { %v830_v0 = vld [vmem:[%s1677_s1 + $0x98] sm:$0x1]  ;;  %v829_v1 = vld [vmem:[%s1677_s1 + $0x90] sm:$0xff]  ;;  %v828_v2 = vld [vmem:[%s1677_s1 + $0x88] sm:$0xff] }
   0x2   :  { %1005 = vmatprep.subr.msk.mxu0 %vm111_vm0, %v830_v0  ;;  %1207 = vmatprep.subr.msk.mxu1 %vm111_vm0, %v830_v0  ;;  %v827_v3 = vld [vmem:[%s1677_s1 + $0x80] sm:$0xff]  ;;  %v826_v4 = vld [vmem:[%s1677_s1 + $0x78] sm:$0xff]  ;;  %v825_v5 = vld [vmem:[%s1677_s1 + $0x70] sm:$0xff] }
   0x3   :  { %1006 = vmatpush3.msk.msra.mxu0 %vm111_vm0, %v830_v0  ;;  %1217 = vmatpush3.msk.msra.mxu1 %vm111_vm0, %v830_v0  ;;  %v824_v6 = vld [vmem:[%s1677_s1 + $0x68] sm:$0xff]  ;;  %v823_v7 = vld [vmem:[%s1677_s1 + $0x60] sm:$0xff]  ;;  %v822_v8 = vld [vmem:[%s1677_s1 + $0x58] sm:$0xff] }
   0x4   :  { %1007 = vmatprep.subr.mxu0 %v829_v1  ;;  %1208 = vmatprep.subr.mxu1 %v829_v1  ;;  %v821_v9 = vld [vmem:[%s1677_s1 + $0x50] sm:$0xff]  ;;  %v1303_v10 = vld [vmem:[%s1678_s0 + $0x8] sm:$0xff]  ;;  %v1308_v11 = vld [vmem:[%s1678_s0 + $0x58] sm:$0xff] }
   0x5   :  { %1008 = vmatpush3.msra.mxu0 %v829_v1  ;;  %1218 = vmatpush3.msra.mxu1 %v829_v1  ;;  %v1313_v12 = vld [vmem:[%s1678_s0 + $0x10] sm:$0xff]  ;;  %v1318_v13 = vld [vmem:[%s1678_s0 + $0x60] sm:$0xff]  ;;  %v50_v14 = vld [vmem:[%s1677_s1 + $0x48] sm:$0x1] }
   0x6   :  { %1009 = vmatprep.subr.mxu0 %v828_v2  ;;  %1209 = vmatprep.subr.mxu1 %v828_v2  ;;  %v874_v15 = vld [vmem:[%s1677_s1 + $0xe8] sm:$0x1]  ;;  %v49_v16 = vld [vmem:[%s1677_s1 + $0x40] sm:$0xff]  ;;  %v1345_v18 = vld [vmem:[%s1678_s0 + $0x18] sm:$0xff] }
   0x7   :  { %1010 = vmatpush3.msra.mxu0 %v828_v2  ;;  %1219 = vmatpush3.msra.mxu1 %v828_v2  ;;  %v873_v17 = vld [vmem:[%s1677_s1 + $0xe0] sm:$0xff]  ;;  %v48_v19 = vld [vmem:[%s1677_s1 + $0x38] sm:$0xff]  ;;  %v47_v22 = vld [vmem:[%s1677_s1 + $0x30] sm:$0xff] }
   0x8   :  { %1011 = vmatprep.subr.mxu0 %v827_v3  ;;  %1210 = vmatprep.subr.mxu1 %v827_v3  ;;  %v1355_v20 = vld [vmem:[%s1678_s0 + $0x20] sm:$0xff]  ;;  %v872_v21 = vld [vmem:[%s1677_s1 + $0xd8] sm:$0xff]  ;;  %v871_v23 = vld [vmem:[%s1677_s1 + $0xd0] sm:$0xff] }
   0x9   :  { %1012 = vmatpush3.msra.mxu0 %v827_v3  ;;  %1220 = vmatpush3.msra.mxu1 %v827_v3  ;;  %v1373_v24 = vld [vmem:[%s1678_s0 + $0x28] sm:$0xff]  ;;  %v1381_v26 = vld [vmem:[%s1678_s0 + $0x30] sm:$0xff]  ;;  %v45_v30 = vld [vmem:[%s1677_s1 + $0x20] sm:$0xff] }
   0xa   :  { %1013 = vmatprep.subr.mxu0 %v826_v4  ;;  %1211 = vmatprep.subr.mxu1 %v826_v4  ;;  %v46_v25 = vld [vmem:[%s1677_s1 + $0x28] sm:$0xff]  ;;  %v1396_v29 = vld [vmem:[%s1678_s0 + $0x70] sm:$0xff]  ;;  %v869_v31 = vld [vmem:[%s1677_s1 + $0xc0] sm:$0xff] }
   0xb   :  { %1014 = vmatpush3.msra.mxu0 %v826_v4  ;;  %1221 = vmatpush3.msra.mxu1 %v826_v4  ;;  %v870_v27 = vld [vmem:[%s1677_s1 + $0xc8] sm:$0xff]  ;;  %v30_v32 = vld [vmem:[%s1678_s0 + $0x38] sm:$0xff]  ;;  %v31_v34 = vld [vmem:[%s1678_s0 + $0x40] sm:$0xff] }
   0xc   :  { %1015 = vmatprep.subr.mxu0 %v825_v5  ;;  %1212 = vmatprep.subr.mxu1 %v825_v5  ;;  %v1391_v28 = vld [vmem:[%s1678_s0 + $0x68] sm:$0xff]  ;;  %v44_v33 = vld [vmem:[%s1677_s1 + $0x18] sm:$0xff]  ;;  %v39_v37 = vld [vmem:[%s1678_s0 + $0x80] sm:$0xff] }
   0xd   :  { %1016 = vmatpush3.msra.mxu0 %v825_v5  ;;  %1222 = vmatpush3.msra.mxu1 %v825_v5  ;;  %v868_v35 = vld [vmem:[%s1677_s1 + $0xb8] sm:$0xff]  ;;  %v43_v38 = vld [vmem:[%s1677_s1 + $0x10] sm:$0xff]  ;;  %v32_v40 = vld [vmem:[%s1678_s0 + $0x48] sm:$0xff] }
   0xe   :  { %1017 = vmatprep.subr.mxu0 %v824_v6  ;;  %1213 = vmatprep.subr.mxu1 %v824_v6  ;;  %v1426_v36 = vld [vmem:[%s1678_s0 + $0x78] sm:$0xff]  ;;  %v867_v39 = vld [vmem:[%s1677_s1 + $0xb0] sm:$0xff]  ;;  %v42_v41 = vld [vmem:[%s1677_s1 + $0x8] sm:$0xff] }
   0xf   :  { %1018 = vmatpush3.msra.mxu0 %v824_v6  ;;  %1223 = vmatpush3.msra.mxu1 %v824_v6  ;;  %v33_v42 = vld [vmem:[%s1678_s0 + $0x50] sm:$0xff]  ;;  %v866_v43 = vld [vmem:[%s1677_s1 + $0xa8] sm:$0xff]  ;;  %v41_v44 = vld [vmem:[%s1677_s1] sm:$0xff] }
  0x10   :  { %1019 = vmatprep.subr.mxu0 %v823_v7  ;;  %1214 = vmatprep.subr.mxu1 %v823_v7  ;;  %v865_v45 = vld [vmem:[%s1677_s1 + $0xa0] sm:$0xff]  ;;  %v40_v47 = vld [vmem:[%s1678_s0 + $0x88] sm:$0xff]  ;;  %v726_v49 = vld [vmem:[%s1679_s3 + $0x78] sm:$0xff] }
  0x11   :  { %1020 = vmatpush3.msra.mxu0 %v823_v7  ;;  %1224 = vmatpush3.msra.mxu1 %v823_v7  ;;  %v23_v46 = vld [vmem:[%s1678_s0] sm:$0xff]  ;;  %v636_v50 = vld [vmem:[%s1680_s2 + $0x78] sm:$0xff]  ;;  %v725_v51 = vld [vmem:[%s1679_s3 + $0x70] sm:$0xff] }
  0x12   :  { %1021 = vmatprep.subr.mxu0 %v822_v8  ;;  %1215 = vmatprep.subr.mxu1 %v822_v8  ;;  %v635_v52 = vld [vmem:[%s1680_s2 + $0x70] sm:$0xff]  ;;  %v724_v53 = vld [vmem:[%s1679_s3 + $0x68] sm:$0xff]  ;;  %v723_v55 = vld [vmem:[%s1679_s3 + $0x60] sm:$0xff] }
  0x13   :  { %1022 = vmatpush3.msra.mxu0 %v822_v8  ;;  %1225 = vmatpush3.msra.mxu1 %v822_v8  ;;  %v634_v54 = vld [vmem:[%s1680_s2 + $0x68] sm:$0xff]  ;;  %v633_v56 = vld [vmem:[%s1680_s2 + $0x60] sm:$0xff]  ;;  %v722_v57 = vld [vmem:[%s1679_s3 + $0x58] sm:$0xff] }
  0x14   :  { %1023 = vmatprep.subr.mxu0 %v821_v9  ;;  %1216 = vmatprep.subr.mxu1 %v821_v9  ;;  %v632_v58 = vld [vmem:[%s1680_s2 + $0x58] sm:$0xff]  ;;  %v721_v59 = vld [vmem:[%s1679_s3 + $0x50] sm:$0xff]  ;;  %v720_v61 = vld [vmem:[%s1679_s3 + $0x48] sm:$0xff] }
  0x15   :  { %1024 = vmatpush3.msra.mxu0 %v821_v9  ;;  %1226 = vmatpush3.msra.mxu1 %v821_v9  ;;  %v631_v60 = vld [vmem:[%s1680_s2 + $0x50] sm:$0xff]  ;;  %v630_v62 = vld [vmem:[%s1680_s2 + $0x48] sm:$0xff]  ;;  %v719_v63 = vld [vmem:[%s1679_s3 + $0x40] sm:$0xff] }
  0x16   :  { %1025 = vmatprep.mubr.msk.f32.mxu0 %vm62_vm1, %v1303_v10  ;;  %1040 = vmatprep.mubr.msk.f32.mxu1 %vm62_vm1, %v1308_v11  ;;  %v629_v0 = vld [vmem:[%s1680_s2 + $0x40] sm:$0xff]  ;;  %v718_v1 = vld [vmem:[%s1679_s3 + $0x38] sm:$0xff]  ;;  %v717_v3 = vld [vmem:[%s1679_s3 + $0x30] sm:$0xff] }
  0x17   :  { %1026 = vmatmul.mubr.msk.f32.vlgmr.msra.gmra.mxu0 %vm62_vm1, %v1313_v12  ;;  %1041 = vmatmul.mubr.msk.f32.vlgmr.msra.gmra.mxu1 %vm62_vm1, %v1318_v13  ;;  %v628_v2 = vld [vmem:[%s1680_s2 + $0x38] sm:$0xff]  ;;  %v627_v4 = vld [vmem:[%s1680_s2 + $0x30] sm:$0xff]  ;;  %v716_v5 = vld [vmem:[%s1679_s3 + $0x28] sm:$0xff] }
  0x18   :  { %1049 = vmatprep.subr.msk.mxu1 %vm111_vm0, %v50_v14  ;;  %1093 = vmatprep.subr.msk.mxu0 %vm111_vm0, %v874_v15  ;;  %v626_v6 = vld [vmem:[%s1680_s2 + $0x28] sm:$0xff]  ;;  %v715_v7 = vld [vmem:[%s1679_s3 + $0x20] sm:$0xff]  ;;  %v714_v9 = vld [vmem:[%s1679_s3 + $0x18] sm:$0xff] }
  0x19   :  { %1050 = vmatpush3.msk.msra.mxu1 %vm111_vm0, %v50_v14  ;;  %1094 = vmatpush3.msk.msra.mxu0 %vm111_vm0, %v874_v15  ;;  %v625_v8 = vld [vmem:[%s1680_s2 + $0x20] sm:$0xff]  ;;  %v622_v14 = vld [vmem:[%s1680_s2 + $0x8] sm:$0xff] }
  0x1a   :  { %1051 = vmatprep.subr.mxu1 %v49_v16  ;;  %1095 = vmatprep.subr.mxu0 %v873_v17  ;;  %v711_v15 = vld [vmem:[%s1679_s3] sm:$0xff] }
  0x1b   :  { %1028 = vmatprep.mubr.msk.f32.mxu0 %vm62_vm1, %v1345_v18  ;;  %1052 = vmatpush3.msra.mxu1 %v49_v16  ;;  %v621_v16 = vld [vmem:[%s1680_s2] sm:$0xff] }
  0x1c   :  { %1096 = vmatpush3.msra.mxu0 %v873_v17  ;;  %1053 = vmatprep.subr.mxu1 %v48_v19 }
  0x1d   :  { %1029 = vmatmul.mubr.msk.f32.gmra.mxu0 %vm62_vm1, %v1355_v20  ;;  %1097 = vmatprep.subr.mxu0 %v872_v21 }
  0x1e   :  { %1054 = vmatpush3.msra.mxu1 %v48_v19  ;;  %1098 = vmatpush3.msra.mxu0 %v872_v21 }
  0x1f   :  { %1055 = vmatprep.subr.mxu1 %v47_v22  ;;  %1099 = vmatprep.subr.mxu0 %v871_v23 }
  0x20   :  { %1031 = vmatprep.mubr.msk.f32.mxu0 %vm62_vm1, %v1373_v24  ;;  %1056 = vmatpush3.msra.mxu1 %v47_v22 }
  0x21   :  { %1100 = vmatpush3.msra.mxu0 %v871_v23  ;;  %1057 = vmatprep.subr.mxu1 %v46_v25 }
  0x22   :  { %1032 = vmatmul.mubr.msk.f32.gmra.mxu0 %vm62_vm1, %v1381_v26  ;;  %1101 = vmatprep.subr.mxu0 %v870_v27 }
  0x23   :  { %1043 = vmatprep.mubr.msk.f32.mxu1 %vm62_vm1, %v1391_v28  ;;  %1058 = vmatpush3.msra.mxu1 %v46_v25 }
  0x24   :  { %1102 = vmatpush3.msra.mxu0 %v870_v27  ;;  %1044 = vmatmul.mubr.msk.f32.gmra.mxu1 %vm62_vm1, %v1396_v29 }
  0x25   :  { %1059 = vmatprep.subr.mxu1 %v45_v30  ;;  %1103 = vmatprep.subr.mxu0 %v869_v31 }
  0x26   :  { %1034 = vmatprep.mubr.msk.f32.mxu0 %vm62_vm1, %v30_v32  ;;  %1060 = vmatpush3.msra.mxu1 %v45_v30 }
  0x27   :  { %1104 = vmatpush3.msra.mxu0 %v869_v31  ;;  %1061 = vmatprep.subr.mxu1 %v44_v33 }
  0x28   :  { %1035 = vmatmul.mubr.msk.f32.gmra.mxu0 %vm62_vm1, %v31_v34  ;;  %1105 = vmatprep.subr.mxu0 %v868_v35 }
  0x29   :  { %1046 = vmatprep.mubr.msk.f32.mxu1 %vm62_vm1, %v1426_v36  ;;  %1062 = vmatpush3.msra.mxu1 %v44_v33 }
  0x2a   :  { %1106 = vmatpush3.msra.mxu0 %v868_v35  ;;  %1047 = vmatmul.mubr.msk.f32.gmra.mxu1 %vm62_vm1, %v39_v37 }
  0x2b   :  { %1063 = vmatprep.subr.mxu1 %v43_v38  ;;  %1107 = vmatprep.subr.mxu0 %v867_v39 }
  0x2c   :  { %1037 = vmatprep.mubr.msk.f32.mxu0 %vm62_vm1, %v32_v40  ;;  %1064 = vmatpush3.msra.mxu1 %v43_v38 }
  0x2d   :  { %1108 = vmatpush3.msra.mxu0 %v867_v39  ;;  %1065 = vmatprep.subr.mxu1 %v42_v41 }
  0x2e   :  { %1038 = vmatmul.mubr.msk.f32.gmra.mxu0 %vm62_vm1, %v33_v42  ;;  %1109 = vmatprep.subr.mxu0 %v866_v43 }
  0x2f   :  { %1066 = vmatpush3.msra.mxu1 %v42_v41  ;;  %1110 = vmatpush3.msra.mxu0 %v866_v43 }
  0x30   :  { %1067 = vmatprep.subr.mxu1 %v41_v44  ;;  %1111 = vmatprep.subr.mxu0 %v865_v45 }
  0x31   :  { %1068 = vmatpush3.msra.mxu1 %v41_v44  ;;  %1069 = vmatprep.mubr.msk.f32.mxu1 %vm62_vm1, %v23_v46 }
  0x32   :  { %1112 = vmatpush3.msra.mxu0 %v865_v45  ;;  %1113 = vmatprep.mubr.msk.f32.mxu0 %vm62_vm1, %v1313_v12 }
  0x33   :  { %1070 = vmatmul.mubr.msk.f32.vlgmr.msra.gmra.mxu1 %vm62_vm1, %v1303_v10  ;;  %1114 = vmatmul.mubr.msk.f32.vlgmr.msra.gmra.mxu0 %vm62_vm1, %v1345_v18  ;;  %v624_v10 = vld [vmem:[%s1680_s2 + $0x18] sm:$0xff] }
  0x34   :  { %1072 = vmatprep.mubr.msk.f32.mxu1 %vm62_vm1, %v1313_v12  ;;  %1116 = vmatprep.mubr.msk.f32.mxu0 %vm62_vm1, %v1355_v20  ;;  %v623_v12 = vld [vmem:[%s1680_s2 + $0x10] sm:$0xff] }
  0x35   :  { %1172 = vmatprep.subr.mxu0 %v1229_v48  ;;  %1137 = vmatprep.subr.mxu1 %v1229_v48 }
  0x36   :  { %1173 = vmatpush3.msra.mxu0 %v726_v49  ;;  %1138 = vmatpush3.msra.mxu1 %v636_v50 }
  0x37   :  { %1073 = vmatmul.mubr.msk.f32.gmra.mxu1 %vm62_vm1, %v1345_v18  ;;  %1117 = vmatmul.mubr.msk.f32.gmra.mxu0 %vm62_vm1, %v1373_v24 }
  0x38   :  { %1075 = vmatprep.mubr.msk.f32.mxu1 %vm62_vm1, %v1355_v20  ;;  %1119 = vmatprep.mubr.msk.f32.mxu0 %vm62_vm1, %v1381_v26 }
  0x39   :  { %1174 = vmatprep.subr.mxu0 %v1229_v48  ;;  %1139 = vmatprep.subr.mxu1 %v1229_v48 }
  0x3a   :  { %1175 = vmatpush3.msra.mxu0 %v725_v51  ;;  %1140 = vmatpush3.msra.mxu1 %v635_v52 }
  0x3b   :  { %1076 = vmatmul.mubr.msk.f32.gmra.mxu1 %vm62_vm1, %v1373_v24  ;;  %1120 = vmatmul.mubr.msk.f32.gmra.mxu0 %vm62_vm1, %v30_v32 }
  0x3c   :  { %1078 = vmatprep.mubr.msk.f32.mxu1 %vm62_vm1, %v1381_v26  ;;  %1122 = vmatprep.mubr.msk.f32.mxu0 %vm62_vm1, %v31_v34 }
  0x3d   :  { %1176 = vmatprep.subr.mxu0 %v1229_v48  ;;  %1141 = vmatprep.subr.mxu1 %v1229_v48 }
  0x3e   :  { %1177 = vmatpush3.msra.mxu0 %v724_v53  ;;  %1142 = vmatpush3.msra.mxu1 %v634_v54 }
  0x3f   :  { %1079 = vmatmul.mubr.msk.f32.gmra.mxu1 %vm62_vm1, %v30_v32  ;;  %1123 = vmatmul.mubr.msk.f32.gmra.mxu0 %vm62_vm1, %v32_v40 }
  0x40   :  { %1081 = vmatprep.mubr.msk.f32.mxu1 %vm62_vm1, %v31_v34  ;;  %1125 = vmatprep.mubr.msk.f32.mxu0 %vm62_vm1, %v33_v42 }
  0x41   :  { %1178 = vmatprep.subr.mxu0 %v1229_v48  ;;  %1143 = vmatprep.subr.mxu1 %v1229_v48 }
  0x42   :  { %1179 = vmatpush3.msra.mxu0 %v723_v55  ;;  %1144 = vmatpush3.msra.mxu1 %v633_v56 }
  0x43   :  { %1082 = vmatmul.mubr.msk.f32.gmra.mxu1 %vm62_vm1, %v32_v40  ;;  %1126 = vmatmul.mubr.msk.f32.gmra.mxu0 %vm62_vm1, %v1308_v11 }
  0x44   :  { %1084 = vmatprep.mubr.msk.f32.mxu1 %vm62_vm1, %v33_v42  ;;  %1128 = vmatprep.mubr.msk.f32.mxu0 %vm62_vm1, %v1318_v13 }
  0x45   :  { %1180 = vmatprep.subr.mxu0 %v1229_v48  ;;  %1145 = vmatprep.subr.mxu1 %v1229_v48 }
  0x46   :  { %1181 = vmatpush3.msra.mxu0 %v722_v57  ;;  %1146 = vmatpush3.msra.mxu1 %v632_v58 }
  0x47   :  { %1085 = vmatmul.mubr.msk.f32.gmra.mxu1 %vm62_vm1, %v1308_v11  ;;  %1129 = vmatmul.mubr.msk.f32.gmra.mxu0 %vm62_vm1, %v1391_v28  ;;  %v713_v11 = vld [vmem:[%s1679_s3 + $0x10] sm:$0xff] }
  0x48   :  { %1087 = vmatprep.mubr.msk.f32.mxu1 %vm62_vm1, %v1318_v13  ;;  %1131 = vmatprep.mubr.msk.f32.mxu0 %vm62_vm1, %v1396_v29  ;;  %v712_v13 = vld [vmem:[%s1679_s3 + $0x8] sm:$0xff] }
  0x49   :  { %1182 = vmatprep.subr.mxu0 %v1229_v48  ;;  %1147 = vmatprep.subr.mxu1 %v1229_v48 }
  0x4a   :  { %1183 = vmatpush3.msra.mxu0 %v721_v59  ;;  %1148 = vmatpush3.msra.mxu1 %v631_v60 }
  0x4b   :  { %1088 = vmatmul.mubr.msk.f32.gmra.mxu1 %vm62_vm1, %v1391_v28  ;;  %1132 = vmatmul.mubr.msk.f32.gmra.mxu0 %vm62_vm1, %v1426_v36 }
  0x4c   :  { %1090 = vmatprep.mubr.msk.f32.mxu1 %vm62_vm1, %v1396_v29  ;;  %1134 = vmatprep.mubr.msk.f32.mxu0 %vm62_vm1, %v39_v37 }
  0x4d   :  { %1184 = vmatprep.subr.mxu0 %v1229_v48  ;;  %1149 = vmatprep.subr.mxu1 %v1229_v48 }
  0x4e   :  { %1185 = vmatpush3.msra.mxu0 %v720_v61  ;;  %1150 = vmatpush3.msra.mxu1 %v630_v62 }
  0x4f   :  { %1091 = vmatmul.mubr.msk.f32.gmra.mxu1 %vm62_vm1, %v1426_v36  ;;  %1135 = vmatmul.mubr.msk.f32.gmra.mxu0 %vm62_vm1, %v40_v47 }
  0x50   :  { %1186 = vmatprep.subr.mxu0 %v1229_v48  ;;  %1151 = vmatprep.subr.mxu1 %v1229_v48 }
  0x51   :  { %1187 = vmatpush3.msra.mxu0 %v719_v63  ;;  %1152 = vmatpush3.msra.mxu1 %v629_v0 }
  0x52   :  { %1188 = vmatprep.subr.mxu0 %v1229_v48  ;;  %1153 = vmatprep.subr.mxu1 %v1229_v48 }
  0x53   :  { %1189 = vmatpush3.msra.mxu0 %v718_v1  ;;  %1154 = vmatpush3.msra.mxu1 %v628_v2 }
  0x54   :  { %1190 = vmatprep.subr.mxu0 %v1229_v48  ;;  %1155 = vmatprep.subr.mxu1 %v1229_v48 }
  0x55   :  { %1191 = vmatpush3.msra.mxu0 %v717_v3  ;;  %1156 = vmatpush3.msra.mxu1 %v627_v4 }
  0x56   :  { %1192 = vmatprep.subr.mxu0 %v1229_v48  ;;  %1157 = vmatprep.subr.mxu1 %v1229_v48 }
  0x57   :  { %1193 = vmatpush3.msra.mxu0 %v716_v5  ;;  %1158 = vmatpush3.msra.mxu1 %v626_v6 }
  0x58   :  { %1194 = vmatprep.subr.mxu0 %v1229_v48  ;;  %1159 = vmatprep.subr.mxu1 %v1229_v48 }
  0x59   :  { %1195 = vmatpush3.msra.mxu0 %v715_v7  ;;  %1160 = vmatpush3.msra.mxu1 %v625_v8 }
  0x5a   :  { %1196 = vmatprep.subr.mxu0 %v1229_v48  ;;  %1161 = vmatprep.subr.mxu1 %v1229_v48 }
  0x5b   :  { %1197 = vmatpush3.msra.mxu0 %v714_v9  ;;  %1162 = vmatpush3.msra.mxu1 %v624_v10 }
  0x5c   :  { %1198 = vmatprep.subr.mxu0 %v1229_v48  ;;  %1163 = vmatprep.subr.mxu1 %v1229_v48 }
  0x5d   :  { %1199 = vmatpush3.msra.mxu0 %v713_v11  ;;  %1164 = vmatpush3.msra.mxu1 %v623_v12 }
  0x5e   :  { %1200 = vmatprep.subr.mxu0 %v1229_v48  ;;  %1165 = vmatprep.subr.mxu1 %v1229_v48 }
  0x5f   :  { %1201 = vmatpush3.msra.mxu0 %v712_v13  ;;  %1166 = vmatpush3.msra.mxu1 %v622_v14 }
  0x60   :  { %1202 = vmatprep.subr.mxu0 %v1229_v48  ;;  %1167 = vmatprep.subr.mxu1 %v1229_v48 }
  0x61   :  { %1203 = vmatpush3.msra.mxu0 %v711_v15  ;;  %1168 = vmatpush3.msra.mxu1 %v621_v16 }
  0x62   :  { %1169 = vmatprep.mubr.msk.f32.mxu1 %vm1230_vm2, %v1229_v48  ;;  %1204 = vmatprep.mubr.msk.f32.mxu0 %vm1230_vm2, %v1229_v48 }
  0xd7   :  { %v1027_v17 = vpop.f32.mrf.mxu0  ;;  %v1650_v20 = vpop.f32.mrf.mxu1 }
  0xd9   :  { %v181_v18 = vpop.f32.mrf.mxu0  ;;  %v1652_v23 = vpop.f32.mrf.mxu1 }
  0xdd   :  { %v1030_v19 = vpop.f32.mrf.mxu0 }
  0xdf   :  { %v191_v21 = vpop.f32.mrf.mxu0 }
  0xe2   :  { %v1033_v22 = vpop.f32.mrf.mxu0 }
  0xe4   :  { %v201_v24 = vpop.f32.mrf.mxu0  ;;  %v1654_v25 = vpop.f32.mrf.mxu1 }
  0xe6   :  { %v1656_v27 = vpop.f32.mrf.mxu1 }
  0xe8   :  { %v1036_v26 = vpop.f32.mrf.mxu0 }
  0xea   :  { %v211_v28 = vpop.f32.mrf.mxu0  ;;  %v1658_v29 = vpop.f32.mrf.mxu1 }
  0xec   :  { %v1660_v32 = vpop.f32.mrf.mxu1 }
  0xee   :  { %v1039_v30 = vpop.f32.mrf.mxu0 }
  0xf0   :  { %v221_v31 = vpop.f32.mrf.mxu0 }
  0xf3   :  { %v1071_v33 = vpop.f32.mrf.mxu1  ;;  %v1115_v34 = vpop.f32.mrf.mxu0 }
  0xf4   :  { %v338_v35 = vadd.f32 %v1071_v33, %v1027_v17 }
  0xf5   :  { %v332_v36 = vpop.f32.mrf.mxu1  ;;  %v494_v37 = vpop.f32.mrf.mxu0 }
  0xf6   :  { %v333_v38 = vadd.f32 %v332_v36, %v181_v18  ;;  %v574_v41 = vadd.f32 %v1115_v34, %v338_v35 }
  0xf7   :  { %v1074_v39 = vpop.f32.mrf.mxu1  ;;  %v1118_v40 = vpop.f32.mrf.mxu0 }
  0xf8   :  { %v573_v42 = vadd.f32 %v494_v37, %v333_v38  ;;  %v348_v43 = vadd.f32 %v1074_v39, %v1030_v19  ;;  %v590_v51 = vmax.f32 %v574_v41, 0.0 }
  0xf9   :  { %v342_v44 = vpop.f32.mrf.mxu1  ;;  %v504_v45 = vpop.f32.mrf.mxu0 }
  0xfa   :  { %v589_v46 = vmax.f32 %v573_v42, 0.0  ;;  %v343_v47 = vadd.f32 %v342_v44, %v191_v21  ;;  %v576_v48 = vadd.f32 %v1118_v40, %v348_v43 }
  0xfb   :  { %v1077_v49 = vpop.f32.mrf.mxu1  ;;  %v1121_v50 = vpop.f32.mrf.mxu0 }
  0xfc   :  { %v575_v52 = vadd.f32 %v504_v45, %v343_v47  ;;  %v358_v53 = vadd.f32 %v1077_v49, %v1033_v22  ;;  %v605_v56 = vadd.f32 %v590_v51, %v589_v46  ;;  %v592_v59 = vmax.f32 %v576_v48, 0.0 }
  0xfd   :  { %v352_v54 = vpop.f32.mrf.mxu1  ;;  %v514_v55 = vpop.f32.mrf.mxu0 }
  0xfe   :  { %v591_v57 = vmax.f32 %v575_v52, 0.0  ;;  %v353_v58 = vadd.f32 %v352_v54, %v201_v24  ;;  %v578_v63 = vadd.f32 %v1121_v50, %v358_v53 }
  0xff   :  { %v1080_v60 = vpop.f32.mrf.mxu1  ;;  %v1124_v61 = vpop.f32.mrf.mxu0 }
 0x100   :  { %v606_v62 = vadd.f32 %v605_v56, %v591_v57  ;;  %v577_v0 = vadd.f32 %v514_v55, %v353_v58  ;;  %v368_v1 = vadd.f32 %v1080_v60, %v1036_v26  ;;  %v594_v10 = vmax.f32 %v578_v63, 0.0 }
 0x101   :  { %v362_v2 = vpop.f32.mrf.mxu1  ;;  %v524_v3 = vpop.f32.mrf.mxu0 }
 0x102   :  { %v593_v4 = vmax.f32 %v577_v0, 0.0  ;;  %v607_v5 = vadd.f32 %v606_v62, %v592_v59  ;;  %v363_v6 = vadd.f32 %v362_v2, %v211_v28  ;;  %v580_v7 = vadd.f32 %v1124_v61, %v368_v1 }
 0x103   :  { %v1083_v8 = vpop.f32.mrf.mxu1  ;;  %v1127_v9 = vpop.f32.mrf.mxu0  ;;  %v637_v2 = vlaneseq }
 0x104   :  { %v608_v11 = vadd.f32 %v607_v5, %v593_v4  ;;  %v579_v12 = vadd.f32 %v524_v3, %v363_v6  ;;  %v378_v13 = vadd.f32 %v1083_v8, %v1039_v30  ;;  %v596_v19 = vmax.f32 %v580_v7, 0.0  ;;  %v620_v4 = vld [vmem:[%s1681_s4] sm:$0x3] }
 0x105   :  { %v372_v14 = vpop.f32.mrf.mxu1  ;;  %v534_v15 = vpop.f32.mrf.mxu0  ;;  %v638_v3 = vshrl.u32 %v637_v2, 7 }
 0x106   :  { %v595_v16 = vmax.f32 %v579_v12, 0.0  ;;  %v609_v17 = vadd.f32 %v608_v11, %v594_v10  ;;  %v373_v18 = vadd.f32 %v372_v14, %v221_v31  ;;  %v582_v26 = vadd.f32 %v1127_v9, %v378_v13  ;;  %v892_v10 = vld [vmem:[%s1682_s5] ss:$0 sm:$0xff] }
 0x107   :  { %v1086_v21 = vpop.f32.mrf.mxu1  ;;  %v1130_v22 = vpop.f32.mrf.mxu0  ;;  %v639_v13 = vsub.s32 0, %v638_v3  ;;  %v813_v14 = vand.u32 127, %v637_v2 }
 0x108   :  { %v610_v24 = vadd.f32 %v609_v17, %v595_v16  ;;  %v581_v33 = vadd.f32 %v534_v15, %v373_v18  ;;  %v388_v28 = vadd.f32 %v1086_v21, %v1650_v20  ;;  %v598_v41 = vmax.f32 %v582_v26, 0.0 }
 0x109   :  { %v382_v34 = vpop.f32.mrf.mxu1  ;;  %v544_v35 = vpop.f32.mrf.mxu0  ;;  %v640_v15 = vrot.slane %v620_v4, %v639_v13  ;;  %vm814_vm3 = vcmp.eq.s32.totalorder %v813_v14, 32 }
 0x10a   :  { %v597_v36 = vmax.f32 %v581_v33, 0.0  ;;  %v611_v37 = vadd.f32 %v610_v24, %v596_v19  ;;  %v383_v38 = vadd.f32 %v382_v34, %v1652_v23  ;;  %v584_v30 = vadd.f32 %v1130_v22, %v388_v28 }
 0x10b   :  { %v1089_v39 = vpop.f32.mrf.mxu1  ;;  %v1133_v40 = vpop.f32.mrf.mxu0 }
 0x10c   :  { %v612_v42 = vadd.f32 %v611_v37, %v597_v36  ;;  %v583_v31 = vadd.f32 %v544_v35, %v383_v38  ;;  %v398_v43 = vadd.f32 %v1089_v39, %v1654_v25  ;;  %v600_v48 = vmax.f32 %v584_v30, 0.0 }
 0x10d   :  { %v392_v44 = vpop.f32.mrf.mxu1  ;;  %v554_v45 = vpop.f32.mrf.mxu0 }
 0x10e   :  { %v599_v46 = vmax.f32 %v583_v31, 0.0  ;;  %v613_v47 = vadd.f32 %v612_v42, %v598_v41  ;;  %v393_v20 = vadd.f32 %v392_v44, %v1656_v27  ;;  %v586_v52 = vadd.f32 %v1133_v40, %v398_v43 }
 0x10f   :  { %v1092_v49 = vpop.f32.mrf.mxu1  ;;  %v1136_v50 = vpop.f32.mrf.mxu0 }
 0x110   :  { %v614_v51 = vadd.f32 %v613_v47, %v599_v46  ;;  %v585_v23 = vadd.f32 %v554_v45, %v393_v20  ;;  %v408_v53 = vadd.f32 %v1092_v49, %v1658_v29  ;;  %v602_v58 = vmax.f32 %v586_v52, 0.0 }
 0x111   :  { %v402_v54 = vpop.f32.mrf.mxu1  ;;  %v564_v25 = vpop.f32.mrf.mxu0  ;;  %v729_v29 = vsub.s32 1, %v638_v3 }
 0x112   :  { %v601_v55 = vmax.f32 %v585_v23, 0.0  ;;  %v615_v56 = vadd.f32 %v614_v51, %v600_v48  ;;  %v403_v57 = vadd.f32 %v402_v54, %v1660_v32  ;;  %v588_v60 = vadd.f32 %v1136_v50, %v408_v53 }
 0x113   :  { %v730_v32 = vrot.slane %v620_v4, %v729_v29 }
 0x114   :  { %v616_v59 = vadd.f32 %v615_v56, %v601_v55  ;;  %v587_v61 = vadd.f32 %v564_v25, %v403_v57  ;;  %v604_v63 = vmax.f32 %v588_v60, 0.0 }
 0x116   :  { %v603_v62 = vmax.f32 %v587_v61, 0.0  ;;  %v617_v27 = vadd.f32 %v616_v59, %v602_v58 }
 0x118   :  { %v618_v0 = vadd.f32 %v617_v27, %v603_v62 }
 0x11a   :  { %v619_v1 = vadd.f32 %v618_v0, %v604_v63 }
 0x11c   :  { %1170 = vmatmul.mubr.f32.vlgmr.msra.gmra.mxu1 %v619_v1  ;;  %1205 = vmatmul.mubr.f32.vlgmr.msra.gmra.mxu0 %v619_v1 }
 0x1dc   :  { %v707_v5 = vpop.f32.mrf.mxu1  ;;  %v797_v6 = vpop.f32.mrf.mxu0 }
 0x1dd   :  { %v798_v7 = vadd.f32 %v797_v6, %v730_v32  ;;  %v708_v16 = vadd.f32 %v707_v5, %v640_v15 }
 0x1de   :  { %v1171_v8 = vpop.f32.mrf.mxu1  ;;  %v1206_v9 = vpop.f32.mrf.mxu0 }
 0x1df   :  { %v801_v11 = vmax.f32 %v798_v7, 0.0 }
 0x1e1   :  { %v809_v12 = vmul.f32 %v892_v10, %v801_v11 }
 0x1e3   :  { %810 = vadd.xlane.f32.xlu0 %v809_v12 }
 0x26c   :  { %v811_v17 = vpop.xlane.xlu0 %810 }
 0x26d   :  { %v815_v18 = vsel %vm814_vm3, %v811_v17, %v708_v16 }
 0x26e   :  { %816 = vst [vmem:[%s1683_s6] sm:$0xff] %v815_v18 }

</bundles_post_ra>
